<compile_context>
chip_gen: v6e
topology: v6e:2x2x1
jax: 0.10.0
libtpu: 0.0.40
codegen_flags: <defaults>
</compile_context>

<pallas_src>
import functools

import jax
import jax.numpy as jnp
from jax.experimental import pallas as pl
from jax.experimental.pallas import tpu as pltpu

_LANES = 128
_MIB = 1024 * 1024


def _cdiv(a, b):
    return -(-a // b)


def _round_up(a, m):
    return _cdiv(a, m) * m


def _aptx_kernel(x_ref, o_ref, *, alpha, beta, gamma):
    x = x_ref[...]
    # alpha/beta/gamma are Python floats (weak-typed): bf16 stays bf16, f32 stays
    # f32.  tanh -> EUP, mul/add -> VPU.  HBM-bound on v5e/v6e (on v5e bf16 math
    # is widened to f32 by the VPU anyway, so no effort is spent there).
    o_ref[...] = ((alpha + jnp.tanh(beta * x)) * (gamma * x)).astype(o_ref.dtype)


def _aptx_ref(x, alpha, beta, gamma):
    # Plain-jnp path for tiny tensors and ragged tails (<128 elements).
    return (alpha + jnp.tanh(beta * x)) * (gamma * x)


def _chip_profile():
    """Per-generation tuning: (block_bytes, vmem_limit_bytes|None, num_tc, vmem_cap)."""
    try:
        kind = jax.devices()[0].device_kind.lower()
    except Exception:  # pragma: no cover - defensive
        kind = ""
    if "v7" in kind:
        # v7x: ~3.2 TB/s/TC, 2 TCs, 64 MiB physical VMEM (32 MiB default scoped).
        # 8 MiB x (in + out) x double-buffering = 32 MiB -> raise the scoped
        # limit explicitly, leaving headroom under the 64 MiB physical.
        return 8 * _MIB, 40 * _MIB, 2, 48 * _MIB
    if "v6" in kind:
        # v6e: ~1.4 TB/s; 6 MiB x 4 = 24 MiB fits the 32 MiB default scoped VMEM.
        return 6 * _MIB, None, 1, 100 * _MIB
    if "v5e" in kind or "v5 lite" in kind or "v5lite" in kind:
        # v5e: ~0.8 TB/s; 2 MiB already amortizes the ~0.35 us/step overhead and
        # 2 MiB x 4 = 8 MiB stays well under the 16 MiB default scoped VMEM.
        return 2 * _MIB, None, 1, 100 * _MIB
    if "v5" in kind or "v4" in kind:
        # v5p / v4: megacore (2 TCs share the grid), 128 MiB VMEM.
        return 4 * _MIB, None, 2, 100 * _MIB
    # Unknown chip (or interpreter): conservative defaults.
    return 2 * _MIB, None, 1, 48 * _MIB


def aptx_activation(x, alpha=1.0, beta=1.0, gamma=0.5, block_bytes=None):
    orig_shape = x.shape
    dtype = x.dtype
    itemsize = jnp.dtype(dtype).itemsize
    alpha, beta, gamma = float(alpha), float(beta), float(gamma)

    n = x.size
    x_flat = jnp.ravel(x)
    tail = n % _LANES
    n_main = n - tail
    rows = n_main // _LANES

    if rows == 0:
        # Fewer than 128 elements: a kernel launch is pure overhead.
        return _aptx_ref(x_flat, alpha, beta, gamma).astype(dtype).reshape(orig_shape)

    # --- chip-aware block sizing ----------------------------------------------
    def_block, vmem_limit, num_tc, vmem_cap = _chip_profile()
    headroom = 2 * _MIB
    if block_bytes is None:
        block_bytes = def_block
    else:
        block_bytes = int(block_bytes)
        # Guardrail: in+out, double-buffered, must fit the VMEM budget
        # (16 MiB default scope on v5e; only 64 MiB physical on v7x).
        max_block = max((vmem_cap - headroom) // 4, 8 * _LANES * itemsize)
        block_bytes = min(block_bytes, max_block)
        needed = 4 * block_bytes + headroom
        if needed > 16 * _MIB and (vmem_limit is None or vmem_limit < needed):
            vmem_limit = min(needed, vmem_cap)

    # Sublane multiple respecting packed-dtype tile minimums (8 f32 / 16 bf16 / 32 i8).
    sub = max(8, 32 // itemsize)
    target_rows = max(sub, (block_bytes // (_LANES * itemsize)) // sub * sub)
    block_rows = min(target_rows, rows)

    # Split a single-block tensor across the two TensorCores (2-TC chips only)
    # when each half carries >= ~1 us of HBM traffic.  On 1-TC v5e/v6e the split
    # would just add a ~0.35 us grid step.
    full_bytes = 2 * rows * _LANES * itemsize            # in + out
    if (num_tc >= 2 and block_rows == rows and rows >= 2 * sub
            and full_bytes >= 4 * _MIB):
        block_rows = _round_up(_cdiv(rows, 2), sub)

    grid_len = _cdiv(rows, block_rows)

    # Even out small odd grids on 2-TC chips so neither core idles ~1/3 of the time.
    if num_tc >= 2 and 3 <= grid_len <= 8 and grid_len % 2 == 1:
        cand = max(_round_up(_cdiv(rows, grid_len + 1), sub), sub)
        if _cdiv(rows, cand) % 2 == 0:
            block_rows = cand
            grid_len = _cdiv(rows, block_rows)

    # Note: if block_rows == rows, "block == full array dim" is legal even when
    # rows % 8 != 0; otherwise block_rows % 8 == 0 and the partial last block is
    # masked by Pallas.

    cost = pl.CostEstimate(
        flops=4 * n_main,              # 3 mul + 1 add per element
        transcendentals=n_main,        # one tanh per element
        bytes_accessed=2 * n_main * itemsize,
    )

    cparams = {"dimension_semantics": ("parallel",)}
    if vmem_limit is not None:
        cparams["vmem_limit_bytes"] = int(vmem_limit)

    kernel = functools.partial(_aptx_kernel, alpha=alpha, beta=beta, gamma=gamma)

    x2d = (x_flat[:n_main] if tail else x_flat).reshape(rows, _LANES)

    out2d = pl.pallas_call(
        kernel,
        out_shape=jax.ShapeDtypeStruct((rows, _LANES), dtype),
        grid_spec=pltpu.PrefetchScalarGridSpec(
            num_scalar_prefetch=0,
            grid=(grid_len,),
            in_specs=[pl.BlockSpec((block_rows, _LANES), lambda i: (i, 0))],
            out_specs=pl.BlockSpec((block_rows, _LANES), lambda i: (i, 0)),
        ),
        compiler_params=pltpu.CompilerParams(**cparams),
        cost_estimate=cost,
    )(x2d)

    out_flat = out2d.reshape(-1)
    if tail:
        # TODO(synk): a fully fused ragged path would mask the tail in-kernel;
        # the <=127-element jnp tail + concat here is still far cheaper than the
        # old full-tensor pad + slice round-trip.
        tail_out = _aptx_ref(x_flat[n_main:], alpha, beta, gamma).astype(dtype)
        out_flat = jnp.concatenate([out_flat, tail_out])
    return out_flat.reshape(orig_shape)


if __name__ == "__main__":
    key = jax.random.PRNGKey(0)
    x = jax.random.normal(key, (2, 4, 16, 16), dtype=jnp.float32)  # NCHW

    y = aptx_activation(x, alpha=1.0, beta=1.0, gamma=0.5)
    y = jax.block_until_ready(y)

    # Reference check in plain JAX.
    y_ref = (1.0 + jnp.tanh(1.0 * x)) * 0.5 * x
    assert y.shape == x.shape and y.dtype == x.dtype
    assert jnp.allclose(y, y_ref, atol=1e-6, rtol=1e-6)

    print("KERNEL_OK")
</pallas_src>

<mosaic_0001>
module attributes {stable_mosaic.version = 11 : i64} {
  func.func @_aptx_kernel(%arg0: i32, %arg1: memref<16x128xf32, #tpu.memory_space<vmem>>, %arg2: memref<16x128xf32, #tpu.memory_space<vmem>>) attributes {dimension_semantics = [#tpu.dimension_semantics<parallel>], iteration_bounds = array<i64: 1>, scalar_prefetch = 0 : i64, scratch_operands = 0 : i64, tpu.core_type = #tpu.core_type<tc>, window_params = [{transform_indices = @transform_0, window_bounds = array<i64: 16, 128>}, {transform_indices = @transform_1, window_bounds = array<i64: 16, 128>}]} {
    %c0 = arith.constant 0 : index
    %c0_0 = arith.constant 0 : index
    %0 = vector.load %arg1[%c0, %c0_0] : memref<16x128xf32, #tpu.memory_space<vmem>>, vector<16x128xf32>
    %cst = arith.constant 1.000000e+00 : f32
    %1 = vector.broadcast %cst : f32 to vector<16x128xf32>
    %2 = arith.mulf %1, %0 : vector<16x128xf32>
    %3 = math.tanh %2 : vector<16x128xf32>
    %cst_1 = arith.constant 1.000000e+00 : f32
    %4 = vector.broadcast %cst_1 : f32 to vector<16x128xf32>
    %5 = arith.addf %4, %3 : vector<16x128xf32>
    %cst_2 = arith.constant 5.000000e-01 : f32
    %6 = vector.broadcast %cst_2 : f32 to vector<16x128xf32>
    %7 = arith.mulf %6, %0 : vector<16x128xf32>
    %8 = arith.mulf %5, %7 : vector<16x128xf32>
    %c0_3 = arith.constant 0 : index
    %c0_4 = arith.constant 0 : index
    %9 = vector.load %arg2[%c0_3, %c0_4] : memref<16x128xf32, #tpu.memory_space<vmem>>, vector<16x128xf32>
    tpu.vector_store %arg2[%c0_3, %c0_4], %8 {strides = array<i32>} : memref<16x128xf32, #tpu.memory_space<vmem>>, vector<16x128xf32>,
    return
  }
  func.func @transform_0(%arg0: i32) -> (i32, i32) {
    %c0_i32 = arith.constant 0 : i32
    %c0_i32_0 = arith.constant 0 : i32
    return %arg0, %c0_i32 : i32, i32
  }
  func.func @transform_1(%arg0: i32) -> (i32, i32) {
    %c0_i32 = arith.constant 0 : i32
    %c0_i32_0 = arith.constant 0 : i32
    return %arg0, %c0_i32 : i32, i32
  }
}

</mosaic_0001>

<bundles_post_ra>
// kernel: tpu_custom_call.1
= control target key start
LH: loop header
LB: loop body
LE: loop exit
PB: predicated region body
PF: predicated region fallthrough
CT: control target
= control target key end

     0   :  { %6 = vsyncpa [#allocation3], 0  ;;  %s130_s0 = inlined_call_operand.hbm [shape: f32[16,128], index: 0, kind: input, shape index: {}]   ;;  %s131_s1 = inlined_call_operand.hbm [shape: f32[16,128], index: 1, kind: output, shape index: {}]  }
   0x1   :  { %7 = vsyncpa [#allocation4], 0  ;;  %s104_s6 = smov [#allocation2]  }
   0x2   :  { %s13_s7 = sshll.u32 %s104_s6, 4  ;;  %s14_s7 = int_to_ptr.vmem [resolvable:$true] %s13_s7 }
   0x3   :  { %s68_s8 = scalar_lea.vmem %s14_s7, 256  ;;  %p73_p1 = scmp.lt.s32.totalorder %s14_s7, %s14_s7 }
   0x4   :  { %p69_p0 = scmp.ne.s32.totalorder %s14_s7, %s68_s8  ;;  %p74_p2 = scmp.lt.s32.totalorder %s68_s8, %s68_s8 }
   0x6   :  { %p75_p3 = por %p74_p2, %p73_p1 }
   0x8   :  { %p76_p4 = pnand %p75_p3, %p69_p0 }
   0xa   :  { %79 = shalt.err (!%p76_p4)
}
   0xb   :  { %s105_s9 = smov 128   ;;  %s106_s10 = smov 8  }
   0xc   :  { %19 = dma.hbm_to_vmem [thread:$0]  %s130_s0, 256, %s14_s7, [#allocation3], %s105_s9, %s105_s9, %s106_s10  }
   0xd   :  { %100 = dma.done.wait [#allocation3], 256  }
   0xe   :  { %101 = vsyncadd [#allocation3], 4294967040  ;;  %v23_v0 = vld [vmem:[#allocation2] sm:$0xff]  ;;  %v24_v1 = vld [vmem:[#allocation2 + $0x8] sm:$0xff]  ;;  %s107_s13 = smov [#allocation5]  }
   0xf   :  { %56 = vtanh.f32 %v23_v0  ;;  %v29_v2 = vmul.f32 0.5, %v23_v0  ;;  %v30_v4 = vmul.f32 0.5, %v24_v1  ;;  %s40_s14 = sshll.u32 %s107_s13, 4  ;;  %s41_s14 = int_to_ptr.vmem [resolvable:$true] %s40_s14 }
  0x10   :  { %58 = vtanh.f32 %v24_v1  ;;  %s80_s0 = scalar_lea.vmem %s41_s14, 256  ;;  %p85_p6 = scmp.lt.s32.totalorder %s41_s14, %s41_s14 }
  0x11   :  { %p81_p5 = scmp.ne.s32.totalorder %s41_s14, %s80_s0  ;;  %p86_p7 = scmp.lt.s32.totalorder %s80_s0, %s80_s0 }
  0x13   :  { %p87_p8 = por %p86_p7, %p85_p6 }
  0x15   :  { %p88_p9 = pnand %p87_p8, %p81_p5 }
  0x1c   :  { %v57_v3 = vpop.eup %56 }
  0x1d   :  { %v59_v5 = vpop.eup %58  ;;  %v27_v6 = vadd.f32 1.0, %v57_v3 }
  0x1e   :  { %v28_v7 = vadd.f32 1.0, %v59_v5 }
  0x1f   :  { %v31_v8 = vmul.f32 %v29_v2, %v27_v6 }
  0x20   :  { %v32_v9 = vmul.f32 %v30_v4, %v28_v7 }
  0x21   :  { %33 = vst [vmem:[#allocation5] sm:$0xff] %v31_v8 }
  0x22   :  { %34 = vst [vmem:[#allocation5 + $0x8] sm:$0xff] %v32_v9 }
  0x23   :  { %91 = shalt.err (!%p88_p9)
}
  0x24   :  { %46 = dma.vmem_to_hbm [thread:$0]  %s41_s14, 256, %s131_s1, [#allocation4], %s105_s9, %s105_s9, %s106_s10  }
  0x25   :  { %102 = dma.done.wait [#allocation4], 256  }
  0x26   :  { %103 = vsyncadd [#allocation4], 4294967040 }
  0x27   :  { %50 = vsyncpa [#allocation3], 1 }
  0x28   :  { %51 = vsyncpa [#allocation4], 1 }

</bundles_post_ra>
